<compile_context>
chip_gen: v5e
topology: v5e:2x2
jax: 0.10.0
libtpu: 0.0.40
codegen_flags: <defaults>
</compile_context>

<pallas_src>
import functools

import jax
import jax.numpy as jnp
from jax.experimental import pallas as pl
from jax.experimental.pallas import tpu as pltpu

LANES = 128
TILE_B_MAX = 16384  # keeps (B,D)-major lane-padded x blocks + hT ~20 MiB live VMEM


def tanh_mlp_kernel(x_ref, w1_ref, b1_ref, w2_ref, b2_ref, o_ref, *, bf16_act=False):
    # x_ref : (tile_b, D)   w1_ref: (H, D)  (PyTorch nn.Linear layout)
    # b1_ref: (H, 1)        w2_ref: (H, 1)  b2_ref: (1, 1)
    # o_ref : (1, 1, tile_b)  -- batch laid out along lanes (lane-dense output)
    x = x_ref[...]
    # First layer, transposed orientation: hT = W1 @ x^T  -> (H, tile_b).
    # NT dot_general (contract D with D): no explicit transpose emitted, batch lives on lanes.
    hT = jax.lax.dot_general(
        w1_ref[...], x,
        dimension_numbers=(((1,), (1,)), ((), ())),
        preferred_element_type=jnp.float32,
    )
    hT = hT + b1_ref[...]                                         # (H, tile_b)

    if bf16_act:
        # EUP-bound lever for v6e/v7x (accuracy ~1e-2); off by default.
        h = jnp.tanh(hT.astype(jnp.bfloat16))
        z = jnp.sum(h * w2_ref[...].astype(jnp.bfloat16), axis=0,
                    keepdims=True).astype(jnp.float32) + b2_ref[...]
    else:
        h = jnp.tanh(hT)                                          # EUP tanh
        # Second layer has out_features == 1: VPU multiply + sublane reduce, result (1, tile_b)
        # is already lane-major -> unmasked store.
        z = jnp.sum(h * w2_ref[...], axis=0, keepdims=True) + b2_ref[...]

    o_ref[...] = jax.nn.sigmoid(z)[None].astype(o_ref.dtype)      # (1, 1, tile_b)


def _round_up(x, m):
    return ((x + m - 1) // m) * m


def tanh_mlp(x, w1, b1, w2, b2, *, tile_b=None, bf16_act=False):
    """Forward pass of TanhMLP with parameters in PyTorch nn.Linear layout.

    x : (B, D) float32
    w1: (H, D)   b1: (H,)      -- first Linear (H = 64)
    w2: (1, H)   b2: (1,)      -- second Linear (out_features = 1)
    Returns (B, 1) float32 = sigmoid(tanh(x @ w1.T + b1) @ w2.T + b2).
    """
    x = jnp.asarray(x, jnp.float32)
    B, D = x.shape
    H = w1.shape[0]

    if tile_b is None:
        # Adaptive tile: big enough to amortize the ~0.35us/step overhead at large B,
        # small enough to bound padding waste and keep >=8 grid steps when possible.
        tile_b = max(LANES, min(TILE_B_MAX, _round_up(pl.cdiv(B, 8), LANES)))
    assert tile_b % LANES == 0, "tile_b must be a multiple of 128 for lane-dense output blocks"

    # Pad batch to a multiple of tile_b only when needed; padded rows are computed
    # (always finite) and sliced off afterwards.
    n_tiles = pl.cdiv(B, tile_b)
    B_pad = n_tiles * tile_b
    if B_pad != B:
        x = jnp.pad(x, ((0, B_pad - B), (0, 0)))

    w1_m = jnp.asarray(w1, jnp.float32).reshape(H, D)
    b1_col = jnp.asarray(b1, jnp.float32).reshape(H, 1)
    w2_col = jnp.asarray(w2, jnp.float32).reshape(H, 1)   # (1,H) -> (H,1), order preserved
    b2_m = jnp.asarray(b2, jnp.float32).reshape(1, 1)

    kernel = functools.partial(tanh_mlp_kernel, bf16_act=bf16_act)

    out3d = pl.pallas_call(
        kernel,
        out_shape=jax.ShapeDtypeStruct((n_tiles, 1, tile_b), jnp.float32),
        grid_spec=pl.GridSpec(
            grid=(n_tiles,),
            in_specs=[
                pl.BlockSpec((tile_b, D), lambda i: (i, 0)),   # x tile: the only pipelined stream
                pl.BlockSpec((H, D), lambda i: (0, 0)),        # W1 (VMEM-resident across steps)
                pl.BlockSpec((H, 1), lambda i: (0, 0)),        # b1
                pl.BlockSpec((H, 1), lambda i: (0, 0)),        # W2 (as a column)
                pl.BlockSpec((1, 1), lambda i: (0, 0)),        # b2
            ],
            out_specs=pl.BlockSpec((1, 1, tile_b), lambda i: (i, 0, 0)),  # lane-dense output row
        ),
        compiler_params=pltpu.CompilerParams(
            dimension_semantics=("parallel",),     # batch tiles shard across v7x's 2 TensorCores
            vmem_limit_bytes=48 << 20,             # large tiles exceed default scoped VMEM limits
        ),
    )(x, w1_m, b1_col, w2_col, b2_m)

    # (n_tiles, 1, tile_b) flattens row-major in batch order -> (B_pad, 1) reshape is free.
    out = out3d.reshape(B_pad, 1)
    if B_pad != B:
        out = out[:B]
    return out


def reference(x, w1, b1, w2, b2):
    h = jnp.tanh(x @ w1.T + b1.reshape(1, -1))
    return jax.nn.sigmoid(h @ w2.T + b2.reshape(1, 1))


if __name__ == "__main__":
    key = jax.random.PRNGKey(0)
    k_x, k_w1, k_b1, k_w2, k_b2 = jax.random.split(key, 5)

    batch = 16
    input_dim = 16   # stand-in for X_train.shape[1]
    hidden = 64
    out_dim = 1

    # Deterministic PyTorch-style uniform +-1/sqrt(fan_in) init, nn.Linear weight layout.
    x = jax.random.normal(k_x, (batch, input_dim), dtype=jnp.float32)
    lim1 = 1.0 / jnp.sqrt(jnp.float32(input_dim))
    w1 = jax.random.uniform(k_w1, (hidden, input_dim), jnp.float32, -lim1, lim1)
    b1 = jax.random.uniform(k_b1, (hidden,), jnp.float32, -lim1, lim1)
    lim2 = 1.0 / jnp.sqrt(jnp.float32(hidden))
    w2 = jax.random.uniform(k_w2, (out_dim, hidden), jnp.float32, -lim2, lim2)
    b2 = jax.random.uniform(k_b2, (out_dim,), jnp.float32, -lim2, lim2)

    # Small batch (single tile).
    out = jax.block_until_ready(tanh_mlp(x, w1, b1, w2, b2))
    ref = reference(x, w1, b1, w2, b2)
    assert out.shape == (batch, out_dim)
    assert jnp.allclose(out, ref, atol=1e-5, rtol=1e-5)

    # Multi-tile + padding path (adaptive tile_b, B not a multiple of 128).
    batch2 = 300
    x2 = jax.random.normal(jax.random.PRNGKey(1), (batch2, input_dim), dtype=jnp.float32)
    out2 = jax.block_until_ready(tanh_mlp(x2, w1, b1, w2, b2))
    ref2 = reference(x2, w1, b1, w2, b2)
    assert out2.shape == (batch2, out_dim)
    assert jnp.allclose(out2, ref2, atol=1e-5, rtol=1e-5)

    print("KERNEL_OK")
</pallas_src>

<mosaic_0001>
module attributes {stable_mosaic.version = 11 : i64} {
  func.func @tanh_mlp_kernel(%arg0: i32, %arg1: memref<128x16xf32, #tpu.memory_space<vmem>>, %arg2: memref<64x16xf32, #tpu.memory_space<vmem>>, %arg3: memref<64x1xf32, #tpu.memory_space<vmem>>, %arg4: memref<64x1xf32, #tpu.memory_space<vmem>>, %arg5: memref<1x1xf32, #tpu.memory_space<vmem>>, %arg6: memref<1x1x128xf32, #tpu.memory_space<vmem>>) attributes {dimension_semantics = [#tpu.dimension_semantics<parallel>], iteration_bounds = array<i64: 1>, scalar_prefetch = 0 : i64, scratch_operands = 0 : i64, tpu.core_type = #tpu.core_type<tc>, window_params = [{transform_indices = @transform_0, window_bounds = array<i64: 128, 16>}, {pipeline_mode = #tpu.pipeline_mode<synchronous>, transform_indices = @transform_1, window_bounds = array<i64: 64, 16>}, {pipeline_mode = #tpu.pipeline_mode<synchronous>, transform_indices = @transform_2, window_bounds = array<i64: 64, 1>}, {pipeline_mode = #tpu.pipeline_mode<synchronous>, transform_indices = @transform_3, window_bounds = array<i64: 64, 1>}, {pipeline_mode = #tpu.pipeline_mode<synchronous>, transform_indices = @transform_4, window_bounds = array<i64: 1, 1>}, {transform_indices = @transform_5, window_bounds = array<i64: 1, 1, 128>}]} {
    %c0 = arith.constant 0 : index
    %c0_0 = arith.constant 0 : index
    %0 = vector.load %arg1[%c0, %c0_0] : memref<128x16xf32, #tpu.memory_space<vmem>>, vector<128x16xf32>
    %c0_1 = arith.constant 0 : index
    %c0_2 = arith.constant 0 : index
    %1 = vector.load %arg2[%c0_1, %c0_2] : memref<64x16xf32, #tpu.memory_space<vmem>>, vector<64x16xf32>
    %cst = arith.constant dense<0.000000e+00> : vector<64x128xf32>
    %2 = tpu.matmul %1, %0, %cst {dimension_numbers = #tpu.dot_dimension_numbers<[1], [1], [0], [0], [0, 0, 1, 0], [], []>} : vector<64x16xf32>, vector<128x16xf32>, vector<64x128xf32> -> vector<64x128xf32>
    %c0_3 = arith.constant 0 : index
    %c0_4 = arith.constant 0 : index
    %3 = vector.load %arg3[%c0_3, %c0_4] : memref<64x1xf32, #tpu.memory_space<vmem>>, vector<64x1xf32>
    %4 = vector.broadcast %3 : vector<64x1xf32> to vector<64x128xf32>
    %5 = arith.addf %2, %4 : vector<64x128xf32>
    %6 = math.tanh %5 : vector<64x128xf32>
    %c0_5 = arith.constant 0 : index
    %c0_6 = arith.constant 0 : index
    %7 = vector.load %arg4[%c0_5, %c0_6] : memref<64x1xf32, #tpu.memory_space<vmem>>, vector<64x1xf32>
    %8 = vector.broadcast %7 : vector<64x1xf32> to vector<64x128xf32>
    %9 = arith.mulf %6, %8 : vector<64x128xf32>
    %cst_7 = arith.constant dense<0.000000e+00> : vector<128xf32>
    %10 = vector.multi_reduction <add>, %9, %cst_7 [0] : vector<64x128xf32> to vector<128xf32>
    %11 = vector.shape_cast %10 : vector<128xf32> to vector<1x128xf32>
    %c0_8 = arith.constant 0 : index
    %c0_9 = arith.constant 0 : index
    %12 = vector.load %arg5[%c0_8, %c0_9] : memref<1x1xf32, #tpu.memory_space<vmem>>, vector<1x1xf32>
    %13 = vector.broadcast %12 : vector<1x1xf32> to vector<1x128xf32>
    %14 = arith.addf %11, %13 : vector<1x128xf32>
    %15 = arith.negf %14 : vector<1x128xf32>
    %16 = math.exp %15 : vector<1x128xf32>
    %cst_10 = arith.constant 1.000000e+00 : f32
    %17 = vector.broadcast %cst_10 : f32 to vector<1x128xf32>
    %18 = arith.addf %17, %16 : vector<1x128xf32>
    %19 = arith.divf %17, %18 : vector<1x128xf32>
    %20 = vector.shape_cast %19 : vector<1x128xf32> to vector<1x1x128xf32>
    %c0_11 = arith.constant 0 : index
    %c0_12 = arith.constant 0 : index
    %c0_13 = arith.constant 0 : index
    %21 = vector.load %arg6[%c0_11, %c0_12, %c0_13] : memref<1x1x128xf32, #tpu.memory_space<vmem>>, vector<1x1x128xf32>
    tpu.vector_store %arg6[%c0_11, %c0_12, %c0_13], %20 {strides = array<i32>} : memref<1x1x128xf32, #tpu.memory_space<vmem>>, vector<1x1x128xf32>,
    return
  }
  func.func @transform_0(%arg0: i32) -> (i32, i32) {
    %c0_i32 = arith.constant 0 : i32
    %c0_i32_0 = arith.constant 0 : i32
    return %arg0, %c0_i32 : i32, i32
  }
  func.func @transform_1(%arg0: i32) -> (i32, i32) {
    %c0_i32 = arith.constant 0 : i32
    %c0_i32_0 = arith.constant 0 : i32
    %c0_i32_1 = arith.constant 0 : i32
    return %c0_i32, %c0_i32_0 : i32, i32
  }
  func.func @transform_2(%arg0: i32) -> (i32, i32) {
    %c0_i32 = arith.constant 0 : i32
    %c0_i32_0 = arith.constant 0 : i32
    %c0_i32_1 = arith.constant 0 : i32
    return %c0_i32, %c0_i32_0 : i32, i32
  }
  func.func @transform_3(%arg0: i32) -> (i32, i32) {
    %c0_i32 = arith.constant 0 : i32
    %c0_i32_0 = arith.constant 0 : i32
    %c0_i32_1 = arith.constant 0 : i32
    return %c0_i32, %c0_i32_0 : i32, i32
  }
  func.func @transform_4(%arg0: i32) -> (i32, i32) {
    %c0_i32 = arith.constant 0 : i32
    %c0_i32_0 = arith.constant 0 : i32
    %c0_i32_1 = arith.constant 0 : i32
    return %c0_i32, %c0_i32_0 : i32, i32
  }
  func.func @transform_5(%arg0: i32) -> (i32, i32, i32) {
    %c0_i32 = arith.constant 0 : i32
    %c0_i32_0 = arith.constant 0 : i32
    %c0_i32_1 = arith.constant 0 : i32
    return %arg0, %c0_i32, %c0_i32_0 : i32, i32, i32
  }
}

</mosaic_0001>

<bundles_post_ra>
// kernel: tpu_custom_call.1
= control target key start
LH: loop header
LB: loop body
LE: loop exit
PB: predicated region body
PF: predicated region fallthrough
CT: control target
= control target key end

     0   :  { %s684_s0 = inlined_call_operand.vmem [shape: f32[128,16], index: 0, kind: input, shape index: {}]   ;;  %s685_s1 = inlined_call_operand.vmem [shape: f32[64,16], index: 1, kind: input, shape index: {}]   ;;  %s686_s2 = inlined_call_operand.vmem [shape: f32[64,1], index: 2, kind: input, shape index: {}]   ;;  %s687_s3 = inlined_call_operand.vmem [shape: f32[64,1], index: 3, kind: input, shape index: {}]   ;;  %s688_s4 = inlined_call_operand.<no memory space> [shape: f32[1,1], index: 4, kind: input, shape index: {}]   ;;  %s689_s5 = inlined_call_operand.hbm [shape: f32[1,1,128], index: 5, kind: output, shape index: {}]  }
   0x1   :  { %v10_v0 = vstv %s688_s4 }
   0x2   :  { %11 = vst [vmem:[#allocation2] sm:$0x1] %v10_v0 }
   0x3   :  { %v38_v1 = vld [vmem:[%s684_s0 + $0x78] sm:$0xff]  ;;  %vm95_vm0 = vcmask 130048   ;;  %v37_v2 = vld [vmem:[%s684_s0 + $0x70] sm:$0xff]  ;;  %v47_v3 = vld [vmem:[%s686_s2] sm:$0xff]  ;;  %v454_v5 = vmov 0  }
   0x4   :  { %330 = vmatpush.xpose.msk.msra.mxu0 %vm95_vm0, %v38_v1  ;;  %355 = vmatpush.xpose.msk.msra.mxu1 %vm95_vm0, %v38_v1  ;;  %v49_v4 = vld [vmem:[%s686_s2 + $0x10] sm:$0xff] }
   0x5   :  { %356 = vmatpush.xpose.msk.msra.mxu2 %vm95_vm0, %v38_v1  ;;  %357 = vmatpush.xpose.msk.msra.mxu3 %vm95_vm0, %v38_v1 }
   0x6   :  { %405 = vset.pattern.permute.xlu0 %v454_v5  ;;  %406 = vset.pattern.permute.xlu1 %v454_v5 }
   0x7   :  { %57 = vperm.xlu0 %405, %v47_v3   ;;  %67 = vperm.xlu1 %406, %v49_v4  }
   0x8   :  { %12 = vsyncpa [#allocation4], 0  ;;  %331 = vmatpush.xpose.msk.msra.mxu0 %vm95_vm0, %v37_v2  ;;  %358 = vmatpush.xpose.msk.msra.mxu1 %vm95_vm0, %v37_v2  ;;  %v36_v6 = vld [vmem:[%s684_s0 + $0x68] sm:$0xff]  ;;  %v50_v8 = vld [vmem:[%s686_s2 + $0x18] sm:$0xff] }
   0x9   :  { %359 = vmatpush.xpose.msk.msra.mxu2 %vm95_vm0, %v37_v2  ;;  %360 = vmatpush.xpose.msk.msra.mxu3 %vm95_vm0, %v37_v2  ;;  %v48_v7 = vld [vmem:[%s686_s2 + $0x8] sm:$0xff]  ;;  %v35_v9 = vld [vmem:[%s684_s0 + $0x60] sm:$0xff]  ;;  %v34_v10 = vld [vmem:[%s684_s0 + $0x58] sm:$0xff] }
   0xa   :  { %407 = vset.pattern.permute.xlu2 %v454_v5  ;;  %v217_v11 = vld [vmem:[%s687_s3] sm:$0xff]  ;;  %v218_v12 = vld [vmem:[%s687_s3 + $0x8] sm:$0xff]  ;;  %v33_v13 = vld [vmem:[%s684_s0 + $0x50] sm:$0xff] }
   0xb   :  { %v32_v14 = vld [vmem:[%s684_s0 + $0x48] sm:$0xff]  ;;  %v219_v15 = vld [vmem:[%s687_s3 + $0x10] sm:$0xff]  ;;  %v54_v16 = vld [vmem:[%s686_s2 + $0x38] sm:$0xff] }
   0xc   :  { %332 = vmatpush.xpose.msk.msra.mxu0 %vm95_vm0, %v36_v6  ;;  %361 = vmatpush.xpose.msk.msra.mxu1 %vm95_vm0, %v36_v6  ;;  %v31_v17 = vld [vmem:[%s684_s0 + $0x40] sm:$0xff]  ;;  %v30_v18 = vld [vmem:[%s684_s0 + $0x38] sm:$0xff]  ;;  %v222_v21 = vld [vmem:[%s687_s3 + $0x28] sm:$0xff] }
   0xd   :  { %362 = vmatpush.xpose.msk.msra.mxu2 %vm95_vm0, %v36_v6  ;;  %363 = vmatpush.xpose.msk.msra.mxu3 %vm95_vm0, %v36_v6  ;;  %v51_v19 = vld [vmem:[%s686_s2 + $0x20] sm:$0xff]  ;;  %v29_v22 = vld [vmem:[%s684_s0 + $0x30] sm:$0xff]  ;;  %v52_v23 = vld [vmem:[%s686_s2 + $0x28] sm:$0xff] }
   0xe   :  { %77 = vperm.xlu2 %407, %v51_v19   ;;  %v221_v20 = vld [vmem:[%s687_s3 + $0x20] sm:$0xff]  ;;  %v28_v24 = vld [vmem:[%s684_s0 + $0x28] sm:$0xff]  ;;  %v224_v25 = vld [vmem:[%s687_s3 + $0x38] sm:$0xff] }
   0xf   :  { %62 = vperm.xlu0 %405, %v48_v7   ;;  %72 = vperm.xlu1 %406, %v50_v8   ;;  %v286_v26 = vld [vmem:[#allocation2] sm:$0x1]  ;;  %v53_v28 = vld [vmem:[%s686_s2 + $0x30] sm:$0xff]  ;;  %v26_v29 = vld [vmem:[%s684_s0 + $0x18] sm:$0xff]  ;;  %s321_s2 = sshll.u32 %s689_s5, 4  ;;  %s322_s2 = int_to_ptr.hbm [resolvable:$true] %s321_s2 }
  0x10   :  { %333 = vmatpush.xpose.msk.msra.mxu0 %vm95_vm0, %v35_v9  ;;  %364 = vmatpush.xpose.msk.msra.mxu1 %vm95_vm0, %v35_v9  ;;  %v27_v27 = vld [vmem:[%s684_s0 + $0x20] sm:$0xff]  ;;  %v25_v30 = vld [vmem:[%s684_s0 + $0x10] sm:$0xff]  ;;  %v220_v31 = vld [vmem:[%s687_s3 + $0x18] sm:$0xff] }
  0x11   :  { %365 = vmatpush.xpose.msk.msra.mxu2 %vm95_vm0, %v35_v9  ;;  %366 = vmatpush.xpose.msk.msra.mxu3 %vm95_vm0, %v35_v9  ;;  %v24_v32 = vld [vmem:[%s684_s0 + $0x8] sm:$0xff]  ;;  %v23_v33 = vld [vmem:[%s684_s0] sm:$0xff]  ;;  %v223_v34 = vld [vmem:[%s687_s3 + $0x30] sm:$0xff] }
  0x12   :  { %v39_v35 = vld [vmem:[%s685_s1] sm:$0xff]  ;;  %v41_v36 = vld [vmem:[%s685_s1 + $0x10] sm:$0xff]  ;;  %v40_v39 = vld [vmem:[%s685_s1 + $0x8] sm:$0xff] }
  0x13   :  { %v43_v37 = vld [vmem:[%s685_s1 + $0x20] sm:$0xff]  ;;  %v45_v38 = vld [vmem:[%s685_s1 + $0x30] sm:$0xff]  ;;  %v42_v40 = vld [vmem:[%s685_s1 + $0x18] sm:$0xff] }
  0x14   :  { %334 = vmatpush.xpose.msk.msra.mxu0 %vm95_vm0, %v34_v10  ;;  %367 = vmatpush.xpose.msk.msra.mxu1 %vm95_vm0, %v34_v10  ;;  %v44_v41 = vld [vmem:[%s685_s1 + $0x28] sm:$0xff]  ;;  %v46_v42 = vld [vmem:[%s685_s1 + $0x38] sm:$0xff]  ;;  %s455_s1 = smov [#allocation3]  }
  0x15   :  { %368 = vmatpush.xpose.msk.msra.mxu2 %vm95_vm0, %v34_v10  ;;  %369 = vmatpush.xpose.msk.msra.mxu3 %vm95_vm0, %v34_v10  ;;  %s319_s19 = sshll.u32 %s455_s1, 4  ;;  %s320_s19 = int_to_ptr.vmem [resolvable:$true] %s319_s19 }
  0x16   :  { %82 = vperm.xlu2 %407, %v52_v23  }
  0x17   :  { %227 = vperm.xlu0 %405, %v217_v11   ;;  %232 = vperm.xlu1 %406, %v218_v12  }
  0x18   :  { %335 = vmatpush.xpose.msk.msra.mxu0 %vm95_vm0, %v33_v13  ;;  %370 = vmatpush.xpose.msk.msra.mxu1 %vm95_vm0, %v33_v13 }
  0x19   :  { %371 = vmatpush.xpose.msk.msra.mxu2 %vm95_vm0, %v33_v13  ;;  %372 = vmatpush.xpose.msk.msra.mxu3 %vm95_vm0, %v33_v13 }
  0x1c   :  { %336 = vmatpush.xpose.msk.msra.mxu0 %vm95_vm0, %v32_v14  ;;  %373 = vmatpush.xpose.msk.msra.mxu1 %vm95_vm0, %v32_v14 }
  0x1d   :  { %374 = vmatpush.xpose.msk.msra.mxu2 %vm95_vm0, %v32_v14  ;;  %375 = vmatpush.xpose.msk.msra.mxu3 %vm95_vm0, %v32_v14 }
  0x1e   :  { %87 = vperm.xlu2 %407, %v53_v28  }
  0x1f   :  { %237 = vperm.xlu0 %405, %v219_v15   ;;  %92 = vperm.xlu1 %406, %v54_v16  }
  0x20   :  { %337 = vmatpush.xpose.msk.msra.mxu0 %vm95_vm0, %v31_v17  ;;  %376 = vmatpush.xpose.msk.msra.mxu1 %vm95_vm0, %v31_v17 }
  0x21   :  { %377 = vmatpush.xpose.msk.msra.mxu2 %vm95_vm0, %v31_v17  ;;  %378 = vmatpush.xpose.msk.msra.mxu3 %vm95_vm0, %v31_v17 }
  0x24   :  { %338 = vmatpush.xpose.msk.msra.mxu0 %vm95_vm0, %v30_v18  ;;  %379 = vmatpush.xpose.msk.msra.mxu1 %vm95_vm0, %v30_v18 }
  0x25   :  { %380 = vmatpush.xpose.msk.msra.mxu2 %vm95_vm0, %v30_v18  ;;  %381 = vmatpush.xpose.msk.msra.mxu3 %vm95_vm0, %v30_v18 }
  0x26   :  { %242 = vperm.xlu2 %407, %v220_v31  }
  0x27   :  { %247 = vperm.xlu0 %405, %v221_v20   ;;  %252 = vperm.xlu1 %406, %v222_v21  }
  0x28   :  { %339 = vmatpush.xpose.msk.msra.mxu0 %vm95_vm0, %v29_v22  ;;  %382 = vmatpush.xpose.msk.msra.mxu1 %vm95_vm0, %v29_v22 }
  0x29   :  { %383 = vmatpush.xpose.msk.msra.mxu2 %vm95_vm0, %v29_v22  ;;  %384 = vmatpush.xpose.msk.msra.mxu3 %vm95_vm0, %v29_v22 }
  0x2c   :  { %340 = vmatpush.xpose.msk.msra.mxu0 %vm95_vm0, %v28_v24  ;;  %385 = vmatpush.xpose.msk.msra.mxu1 %vm95_vm0, %v28_v24 }
  0x2d   :  { %386 = vmatpush.xpose.msk.msra.mxu2 %vm95_vm0, %v28_v24  ;;  %387 = vmatpush.xpose.msk.msra.mxu3 %vm95_vm0, %v28_v24 }
  0x2e   :  { %257 = vperm.xlu2 %407, %v223_v34  }
  0x2f   :  { %262 = vperm.xlu0 %405, %v224_v25   ;;  %289 = vperm.xlu1 %406, %v286_v26  }
  0x30   :  { %341 = vmatpush.xpose.msk.msra.mxu0 %vm95_vm0, %v27_v27  ;;  %388 = vmatpush.xpose.msk.msra.mxu1 %vm95_vm0, %v27_v27 }
  0x31   :  { %389 = vmatpush.xpose.msk.msra.mxu2 %vm95_vm0, %v27_v27  ;;  %390 = vmatpush.xpose.msk.msra.mxu3 %vm95_vm0, %v27_v27 }
  0x34   :  { %342 = vmatpush.xpose.msk.msra.mxu0 %vm95_vm0, %v26_v29  ;;  %391 = vmatpush.xpose.msk.msra.mxu1 %vm95_vm0, %v26_v29 }
  0x35   :  { %392 = vmatpush.xpose.msk.msra.mxu2 %vm95_vm0, %v26_v29  ;;  %393 = vmatpush.xpose.msk.msra.mxu3 %vm95_vm0, %v26_v29 }
  0x38   :  { %343 = vmatpush.xpose.msk.msra.mxu0 %vm95_vm0, %v25_v30  ;;  %394 = vmatpush.xpose.msk.msra.mxu1 %vm95_vm0, %v25_v30 }
  0x39   :  { %395 = vmatpush.xpose.msk.msra.mxu2 %vm95_vm0, %v25_v30  ;;  %396 = vmatpush.xpose.msk.msra.mxu3 %vm95_vm0, %v25_v30 }
  0x3c   :  { %344 = vmatpush.xpose.msk.msra.mxu0 %vm95_vm0, %v24_v32  ;;  %397 = vmatpush.xpose.msk.msra.mxu1 %vm95_vm0, %v24_v32 }
  0x3d   :  { %398 = vmatpush.xpose.msk.msra.mxu2 %vm95_vm0, %v24_v32  ;;  %399 = vmatpush.xpose.msk.msra.mxu3 %vm95_vm0, %v24_v32 }
  0x40   :  { %345 = vmatpush.xpose.msk.msra.mxu0 %vm95_vm0, %v23_v33  ;;  %400 = vmatpush.xpose.msk.msra.mxu1 %vm95_vm0, %v23_v33 }
  0x41   :  { %401 = vmatpush.xpose.msk.msra.mxu2 %vm95_vm0, %v23_v33  ;;  %402 = vmatpush.xpose.msk.msra.mxu3 %vm95_vm0, %v23_v33 }
  0x43   :  { %346 = vmatmul.msk.f32.vlgmr.msra.gmra.mxu0 %vm95_vm0, %v39_v35  ;;  %348 = vmatmul.msk.f32.vlgmr.msra.gmra.mxu1 %vm95_vm0, %v41_v36 }
  0x44   :  { %350 = vmatmul.msk.f32.vlgmr.msra.gmra.mxu2 %vm95_vm0, %v43_v37  ;;  %352 = vmatmul.msk.f32.vlgmr.msra.gmra.mxu3 %vm95_vm0, %v45_v38 }
  0x4b   :  { %347 = vmatmul.msk.f32.gmra.mxu0 %vm95_vm0, %v40_v39  ;;  %349 = vmatmul.msk.f32.gmra.mxu1 %vm95_vm0, %v42_v40 }
  0x4c   :  { %351 = vmatmul.msk.f32.gmra.mxu2 %vm95_vm0, %v44_v41  ;;  %353 = vmatmul.msk.f32.gmra.mxu3 %vm95_vm0, %v46_v42 }
  0x68   :  { %v78_v45 = vpop.permute.xlu2 %77 }
  0x70   :  { %v83_v48 = vpop.permute.xlu2 %82 }
  0x78   :  { %v88_v53 = vpop.permute.xlu2 %87 }
  0x79   :  { %v58_v43 = vpop.permute.xlu0 %57  ;;  %v68_v44 = vpop.permute.xlu1 %67 }
  0x80   :  { %v243_v8 = vpop.permute.xlu2 %242 }
  0x81   :  { %v63_v46 = vpop.permute.xlu0 %62  ;;  %v73_v47 = vpop.permute.xlu1 %72 }
  0x88   :  { %v258_v27 = vpop.permute.xlu2 %257 }
  0x89   :  { %v228_v49 = vpop.permute.xlu0 %227  ;;  %v233_v52 = vpop.permute.xlu1 %232 }
  0x91   :  { %v238_v61 = vpop.permute.xlu0 %237  ;;  %v93_v3 = vpop.permute.xlu1 %92 }
  0x99   :  { %v248_v13 = vpop.permute.xlu0 %247  ;;  %v253_v23 = vpop.permute.xlu1 %252 }
  0xa1   :  { %v263_v30 = vpop.permute.xlu0 %262  ;;  %v290_v38 = vpop.permute.xlu1 %289 }
  0xa2   :  { %v292_v40 = vperm.slane %v290_v38, 0 }
  0xc0   :  { %v185_v50 = vpop.f32.mrf.mxu0  ;;  %v191_v51 = vpop.f32.mrf.mxu1 }
  0xc1   :  { %v186_v54 = vadd.f32 %v185_v50, %v58_v43  ;;  %v192_v55 = vadd.f32 %v191_v51, %v68_v44 }
  0xc3   :  { %408 = vtanh.f32 %v186_v54 }
  0xc4   :  { %410 = vtanh.f32 %v192_v55 }
  0xc7   :  { %v197_v56 = vpop.f32.mrf.mxu2  ;;  %v203_v57 = vpop.f32.mrf.mxu3 }
  0xc8   :  { %v188_v58 = vpop.f32.mrf.mxu0  ;;  %v194_v59 = vpop.f32.mrf.mxu1  ;;  %v198_v63 = vadd.f32 %v197_v56, %v78_v45  ;;  %v204_v4 = vadd.f32 %v203_v57, %v88_v53 }
  0xc9   :  { %v189_v60 = vadd.f32 %v188_v58, %v63_v46  ;;  %v195_v62 = vadd.f32 %v194_v59, %v73_v47  ;;  %v409_v2 = vpop.eup %408 }
  0xca   :  { %v411_v6 = vpop.eup %410  ;;  %v265_v10 = vmul.f32 %v409_v2, %v228_v49 }
  0xcb   :  { %412 = vtanh.f32 %v189_v60  ;;  %v267_v14 = vmul.f32 %v411_v6, %v238_v61 }
  0xcc   :  { %414 = vtanh.f32 %v195_v62 }
  0xcd   :  { %416 = vtanh.f32 %v198_v63 }
  0xcf   :  { %v200_v0 = vpop.f32.mrf.mxu2  ;;  %v206_v1 = vpop.f32.mrf.mxu3 }
  0xd0   :  { %v201_v5 = vadd.f32 %v200_v0, %v83_v48  ;;  %v207_v9 = vadd.f32 %v206_v1, %v93_v3 }
  0xd1   :  { %v413_v7 = vpop.eup %412 }
  0xd2   :  { %418 = vtanh.f32 %v201_v5  ;;  %v266_v11 = vmul.f32 %v413_v7, %v233_v52  ;;  %v415_v12 = vpop.eup %414 }
  0xd3   :  { %420 = vtanh.f32 %v204_v4  ;;  %v417_v16 = vpop.eup %416  ;;  %v268_v17 = vmul.f32 %v415_v12, %v243_v8 }
  0xd4   :  { %v273_v15 = vadd.f32 %v266_v11, %v265_v10  ;;  %422 = vtanh.f32 %v207_v9  ;;  %v269_v20 = vmul.f32 %v417_v16, %v248_v13 }
  0xd6   :  { %v274_v18 = vadd.f32 %v273_v15, %v267_v14 }
  0xd8   :  { %v419_v19 = vpop.eup %418  ;;  %v275_v21 = vadd.f32 %v274_v18, %v268_v17 }
  0xd9   :  { %v421_v22 = vpop.eup %420  ;;  %v270_v24 = vmul.f32 %v419_v19, %v253_v23 }
  0xda   :  { %v276_v25 = vadd.f32 %v275_v21, %v269_v20  ;;  %v423_v26 = vpop.eup %422  ;;  %v271_v28 = vmul.f32 %v421_v22, %v258_v27 }
  0xdb   :  { %v272_v31 = vmul.f32 %v423_v26, %v263_v30 }
  0xdc   :  { %v277_v29 = vadd.f32 %v276_v25, %v270_v24 }
  0xde   :  { %v278_v32 = vadd.f32 %v277_v29, %v271_v28 }
  0xe0   :  { %v279_v33 = vadd.f32 %v278_v32, %v272_v31 }
  0xe2   :  { %v280_v34 = vrot.slane %v279_v33, 4 }
  0xe4   :  { %v281_v35 = vadd.f32 %v280_v34, %v279_v33 }
  0xe6   :  { %v282_v36 = vrot.slane %v281_v35, 2 }
  0xe8   :  { %v283_v37 = vadd.f32 %v282_v36, %v281_v35 }
  0xea   :  { %v284_v39 = vrot.slane %v283_v37, 1 }
  0xec   :  { %v285_v41 = vadd.f32 %v284_v39, %v283_v37 }
  0xee   :  { %v293_v42 = vadd.f32 %v292_v40, %v285_v41 }
  0xf0   :  { %v354_v43 = vmul.f32 -1.442695, %v293_v42 }
  0xf2   :  { %424 = vpow2.f32 %v354_v43 }
  0xf8   :  { %v425_v44 = vpop.eup %424 }
  0xf9   :  { %v297_v45 = vadd.f32 1.0, %v425_v44 }
  0xfb   :  { %426 = vrcp.f32 %v297_v45  ;;  %v309_v49 = vand.u32 2147483648, %v297_v45  ;;  %v307_v51 = vand.u32 2147483647, %v297_v45  ;;  %vm303_vm2 = vweird.f32 %v297_v45 }
  0xfd   :  { %v310_v53 = vor.u32 1.1754944e-38, %v309_v49  ;;  %vm308_vm4 = vcmp.eq.f32.partialorder %v307_v51, 8.507059e+37 }
 0x101   :  { %v427_v46 = vpop.eup %426 }
 0x102   :  { %v299_v47 = vmul.f32 %v427_v46, %v297_v45  ;;  %vm304_vm1 = vweird.f32 %v427_v46 }
 0x103   :  { %vm305_vm3 = vmor %vm303_vm2, %vm304_vm1 }
 0x104   :  { %v300_v48 = vsub.f32 1.0, %v299_v47 }
 0x106   :  { %v301_v50 = vmul.f32 %v427_v46, %v300_v48 }
 0x108   :  { %v302_v52 = vadd.f32 %v427_v46, %v301_v50 }
 0x10a   :  { %v306_v54 = vsel %vm305_vm3, %v427_v46, %v302_v52 }
 0x10b   :  { %v311_v55 = vsel %vm308_vm4, %v310_v53, %v306_v54 }
 0x10c   :  { %313 = vst [vmem:[#allocation3] sm:$0x1] %v311_v55 }
 0x10d   :  { %324 = dma.vmem_to_hbm [thread:$0]  %s320_s19, 16, %s322_s2, [#allocation4]  }
 0x10e   :  { %452 = dma.done.wait [#allocation4], 16  }
 0x10f   :  { %453 = vsyncadd [#allocation4], 4294967280 }
 0x110   :  { %329 = vsyncpa [#allocation4], 1 }

</bundles_post_ra>
